<compile_context>
chip_gen: v5e
topology: v5e:2x2
jax: 0.10.0
libtpu: 0.0.40
codegen_flags: <defaults>
</compile_context>

<pallas_src>
import jax
import jax.numpy as jnp
from jax.experimental import pallas as pl
from jax.experimental.pallas import tpu as pltpu

_LANES = 128            # vreg lane width
_SUBLANES = 8           # f32 sublane count
_MAX_TILE_ROWS = 4096   # (4096, 128) f32 tile = 2 MiB per buffer
_MIN_SPLIT_ROWS = 64    # below this, one block; above, aim for grid >= 2 (v7x)
_FAST_PATH_ELEMS = 1 << 16  # below this, plain XLA elementwise beats dispatch


def _round_up(a, m):
    return -(-a // m) * m


def _affine_kernel(p_ref, x_ref, o_ref):
    # p_ref: (2,) in SMEM -> [w, c] with c = lin_bias + other + bias.
    # Vector path is a single VPU multiply-add per vreg; no MXU, no XLU.
    o_ref[...] = x_ref[...] * p_ref[0] + p_ref[1]


def model_forward(x, w, lin_bias, other, bias, *, use_pallas=None):
    """Forward of: Linear(1,1)(x) + other + bias.

    x: [B, 1] f32; w / lin_bias / other / bias: [1, 1]. Returns [B, 1].
    """
    B, in_f = x.shape
    assert in_f == 1 and w.shape == (1, 1), "module is Linear(1, 1)"
    n = B  # out_features == 1 -> one output element per batch row

    # Fold the three additive terms once (scalar work, done outside the loop).
    w_s = w.reshape(())
    c_s = lin_bias.reshape(()) + other.reshape(()) + bias.reshape(())

    if use_pallas is None:
        use_pallas = n >= _FAST_PATH_ELEMS
    if not use_pallas:
        # Tiny-batch fast path: a single fused XLA elementwise op.
        return x * w_s + c_s

    params = jnp.stack([w_s, c_s]).astype(x.dtype)  # (2,) SMEM payload

    # Lane-dense view of the flat element stream.  Free (no copy) when
    # B % 128 == 0; otherwise pad only up to the next lane multiple.
    flat = x.reshape(-1)
    padded_n = _round_up(n, _LANES)
    if padded_n != n:
        flat = jnp.pad(flat, (0, padded_n - n))
    rows = padded_n // _LANES
    slab = flat.reshape(rows, _LANES)

    if rows <= _MIN_SPLIT_ROWS:
        # Small problem: one full-extent block (second-to-last dim == full rows
        # is always a legal block shape, even if rows % 8 != 0).
        tile_rows = rows
    else:
        # Ensure >= 2 grid steps (v7x megacore) while capping each buffer at
        # 2 MiB; partial last block is handled by Pallas masking.
        tile_rows = min(_MAX_TILE_ROWS, _round_up(pl.cdiv(rows, 2), _SUBLANES))
    grid = (pl.cdiv(rows, tile_rows),)

    out_slab = pl.pallas_call(
        _affine_kernel,
        out_shape=jax.ShapeDtypeStruct((rows, _LANES), x.dtype),
        grid=grid,
        in_specs=[
            pl.BlockSpec(memory_space=pltpu.MemorySpace.SMEM),      # [w, c]
            pl.BlockSpec((tile_rows, _LANES), lambda i: (i, 0)),    # x slab
        ],
        out_specs=pl.BlockSpec((tile_rows, _LANES), lambda i: (i, 0)),
        compiler_params=pltpu.CompilerParams(
            dimension_semantics=("parallel",)),
    )(params, slab)

    out_flat = out_slab.reshape(-1)
    if padded_n != n:
        out_flat = out_flat[:n]
    return out_flat.reshape(B, 1)


if __name__ == "__main__":
    key = jax.random.PRNGKey(0)
    k_w, k_b, k_other, k_bias = jax.random.split(key, 4)

    # torch.nn.Linear(1, 1): weight [1, 1], bias [1] (kept as [1, 1]).
    w = jax.random.uniform(k_w, (1, 1), jnp.float32, minval=-1.0, maxval=1.0)
    lin_bias = jax.random.uniform(k_b, (1, 1), jnp.float32, minval=-1.0, maxval=1.0)
    # self.other / self.bias were torch.load()'d; synthetic deterministic here.
    other = jax.random.normal(k_other, (1, 1), jnp.float32)
    bias = jax.random.normal(k_bias, (1, 1), jnp.float32)

    def ref_fn(x):
        # Original summation order: ((x @ W^T + b_lin) + other) + bias
        return ((x @ w.T + lin_bias) + other) + bias

    # 1) Original workload: x1 = torch.arange(1, 2).reshape([1, 1])
    #    (default path = tiny-batch fast path).
    x1 = jnp.arange(1, 2, dtype=jnp.float32).reshape(1, 1)
    out1 = jax.block_until_ready(model_forward(x1, w, lin_bias, other, bias))
    assert jnp.allclose(out1, ref_fn(x1), atol=1e-5), (out1, ref_fn(x1))

    # 2) Same B=1 input forced through the Pallas kernel (exercises the
    #    tail-padded single-block path).
    out1p = jax.block_until_ready(
        model_forward(x1, w, lin_bias, other, bias, use_pallas=True))
    assert jnp.allclose(out1p, ref_fn(x1), atol=1e-5), "pallas B=1 mismatch"

    # 3) B multiple of 128 -> zero-copy lane-dense slab path.
    xb = jax.random.normal(jax.random.PRNGKey(1), (2048, 1), jnp.float32)
    outb = jax.block_until_ready(
        model_forward(xb, w, lin_bias, other, bias, use_pallas=True))
    assert jnp.allclose(outb, ref_fn(xb), atol=1e-5), "B=2048 mismatch"

    # 4) Ragged B (not a multiple of 128) -> tail-padded path.
    xc = jax.random.normal(jax.random.PRNGKey(2), (3000, 1), jnp.float32)
    outc = jax.block_until_ready(
        model_forward(xc, w, lin_bias, other, bias, use_pallas=True))
    assert jnp.allclose(outc, ref_fn(xc), atol=1e-5), "B=3000 mismatch"

    print("KERNEL_OK")
</pallas_src>

<mosaic_0001>
module attributes {stable_mosaic.version = 11 : i64} {
  func.func @_affine_kernel(%arg0: i32, %arg1: memref<2xf32, #tpu.memory_space<smem>>, %arg2: memref<1x128xf32, #tpu.memory_space<vmem>>, %arg3: memref<1x128xf32, #tpu.memory_space<vmem>>) attributes {dimension_semantics = [#tpu.dimension_semantics<parallel>], iteration_bounds = array<i64: 1>, scalar_prefetch = 0 : i64, scratch_operands = 0 : i64, tpu.core_type = #tpu.core_type<tc>, window_params = [{transform_indices = @transform_0, window_bounds = array<i64: 2>}, {transform_indices = @transform_1, window_bounds = array<i64: 1, 128>}, {transform_indices = @transform_2, window_bounds = array<i64: 1, 128>}]} {
    %c0 = arith.constant 0 : index
    %c0_0 = arith.constant 0 : index
    %0 = vector.load %arg2[%c0, %c0_0] : memref<1x128xf32, #tpu.memory_space<vmem>>, vector<1x128xf32>
    %c0_1 = arith.constant 0 : index
    %1 = memref.load %arg1[%c0_1] : memref<2xf32, #tpu.memory_space<smem>>
    %2 = vector.broadcast %1 : f32 to vector<1x128xf32>
    %3 = arith.mulf %0, %2 : vector<1x128xf32>
    %c1 = arith.constant 1 : index
    %4 = memref.load %arg1[%c1] : memref<2xf32, #tpu.memory_space<smem>>
    %5 = vector.broadcast %4 : f32 to vector<1x128xf32>
    %6 = arith.addf %3, %5 : vector<1x128xf32>
    %c0_2 = arith.constant 0 : index
    %c0_3 = arith.constant 0 : index
    %7 = vector.load %arg3[%c0_2, %c0_3] : memref<1x128xf32, #tpu.memory_space<vmem>>, vector<1x128xf32>
    tpu.vector_store %arg3[%c0_2, %c0_3], %6 {strides = array<i32>} : memref<1x128xf32, #tpu.memory_space<vmem>>, vector<1x128xf32>,
    return
  }
  func.func @transform_0(%arg0: i32) -> i32 {
    %c0_i32 = arith.constant 0 : i32
    %c0_i32_0 = arith.constant 0 : i32
    return %c0_i32 : i32
  }
  func.func @transform_1(%arg0: i32) -> (i32, i32) {
    %c0_i32 = arith.constant 0 : i32
    %c0_i32_0 = arith.constant 0 : i32
    return %arg0, %c0_i32 : i32, i32
  }
  func.func @transform_2(%arg0: i32) -> (i32, i32) {
    %c0_i32 = arith.constant 0 : i32
    %c0_i32_0 = arith.constant 0 : i32
    return %arg0, %c0_i32 : i32, i32
  }
}

</mosaic_0001>

<bundles_post_ra>
// kernel: tpu_custom_call.1
= control target key start
LH: loop header
LB: loop body
LE: loop exit
PB: predicated region body
PF: predicated region fallthrough
CT: control target
= control target key end

     0   :  { %7 = vsyncpa [#allocation5], 0  ;;  %s162_s0 = inlined_call_operand.hbm [shape: f32[2], index: 0, kind: input, shape index: {}]   ;;  %s163_s1 = inlined_call_operand.hbm [shape: f32[1,128], index: 1, kind: input, shape index: {}]   ;;  %s164_s2 = inlined_call_operand.hbm [shape: f32[1,128], index: 2, kind: output, shape index: {}]  }
   0x1   :  { %8 = vsyncpa [#allocation3], 0 }
   0x2   :  { %9 = vsyncpa [#allocation4], 0  ;;  %s15_s11 = sshll.u32 %s162_s0, 4  ;;  %s24_s14 = sshll.u32 %s163_s1, 4  ;;  %s16_s11 = int_to_ptr.hbm [resolvable:$true] %s15_s11  ;;  %s25_s14 = int_to_ptr.hbm [resolvable:$true] %s24_s14 }
   0x3   :  { %s135_s15 = smov [#allocation2]   ;;  %s136_s16 = smov [#allocation6]  }
   0x4   :  { %18 = dma.hbm_to_smem %s16_s11, 16, %s135_s15, [#allocation5]  }
   0x5   :  { %s26_s17 = sshll.u32 %s136_s16, 4  ;;  %s27_s17 = int_to_ptr.vmem [resolvable:$true] %s26_s17 }
   0x6   :  { %29 = dma.hbm_to_vmem [thread:$0]  %s25_s14, 16, %s27_s17, [#allocation3]  }
   0x7   :  { %129 = dma.done.wait [#allocation5], 16  }
   0x8   :  { %130 = vsyncadd [#allocation5], 4294967280 }
   0x9   :  { %131 = dma.done.wait [#allocation3], 16  }
   0xa   :  { %132 = vsyncadd [#allocation3], 4294967280 }
   0xb   :  { %38 = sfence }
   0xc   :  { %s40_s18 = sld [smem:[#allocation2]]  ;;  %v39_v0 = vld [vmem:[#allocation6] sm:$0x1]  ;;  %s137_s0 = smov [#allocation7]  }
   0xd   :  { %s65_s19 = sld [smem:[#allocation2 + $0x1]]  ;;  %s52_s20 = sshll.u32 %s137_s0, 4  ;;  %s53_s20 = int_to_ptr.vmem [resolvable:$true] %s52_s20 }
   0xe   :  { %s54_s22 = sshll.u32 %s164_s2, 4  ;;  %s55_s22 = int_to_ptr.hbm [resolvable:$true] %s54_s22 }
  0x12   :  { %v41_v1 = vstv %s40_s18 }
  0x13   :  { %v42_v2 = vmul.f32 %v41_v1, %v39_v0  ;;  %v44_v3 = vstv %s65_s19 }
  0x15   :  { %v45_v4 = vadd.f32 %v44_v3, %v42_v2 }
  0x17   :  { %46 = vst [vmem:[#allocation7] sm:$0x1] %v45_v4 }
  0x18   :  { %57 = dma.vmem_to_hbm [thread:$0]  %s53_s20, 16, %s55_s22, [#allocation4]  }
  0x19   :  { %133 = dma.done.wait [#allocation4], 16  }
  0x1a   :  { %134 = vsyncadd [#allocation4], 4294967280 }
  0x1b   :  { %62 = vsyncpa [#allocation3], 1 }
  0x1c   :  { %63 = vsyncpa [#allocation4], 1 }
  0x1d   :  { %64 = vsyncpa [#allocation5], 1 }

</bundles_post_ra>
